<compile_context>
chip_gen: v5e
topology: v5e:2x2
jax: 0.10.0
libtpu: 0.0.40
codegen_flags: <defaults>
</compile_context>

<pallas_src>
import functools

import jax
import jax.numpy as jnp
from jax.experimental import pallas as pl
from jax.experimental.pallas import tpu as pltpu

HIDDEN = 512


def mlp3_kernel(x_ref, w1_ref, b1_ref, w2_ref, b2_ref, w3_ref, b3_ref, o_ref):
    # In-kernel bf16 cast of the streamed x tile (MXU-native operands,
    # f32 accumulation; bias/ReLU math stays f32).
    x = x_ref[...].astype(jnp.bfloat16)
    # Layer 1: Linear(input_dim, 512) + ReLU
    h1 = jnp.dot(x, w1_ref[...], preferred_element_type=jnp.float32)
    h1 = jnp.maximum(h1 + b1_ref[...], 0.0)
    # Layer 2: Linear(512, 512) + ReLU
    h2 = jnp.dot(h1.astype(jnp.bfloat16), w2_ref[...],
                 preferred_element_type=jnp.float32)
    h2 = jnp.maximum(h2 + b2_ref[...], 0.0)
    # Layer 3: Linear(512, output_dim_padded), no activation
    out = jnp.dot(h2.astype(jnp.bfloat16), w3_ref[...],
                  preferred_element_type=jnp.float32)
    o_ref[...] = (out + b3_ref[...]).astype(o_ref.dtype)


def _round_up(n, m):
    return ((n + m - 1) // m) * m


def prepare_params(params):
    """One-time (per-parameter-set) prep: bf16 weights, f32 biases, and
    lane-dense padding of the last layer to a multiple of 128 columns.
    Do NOT call this per forward step."""
    w1, b1, w2, b2, w3, b3 = params
    out_dim = w3.shape[1]
    out_pad = _round_up(max(out_dim, 128), 128)
    if out_pad != out_dim:
        w3 = jnp.pad(w3, ((0, 0), (0, out_pad - out_dim)))
        b3 = jnp.pad(b3, ((0, 0), (0, out_pad - out_dim)))
    prepared = (
        w1.astype(jnp.bfloat16), b1.astype(jnp.float32),
        w2.astype(jnp.bfloat16), b2.astype(jnp.float32),
        w3.astype(jnp.bfloat16), b3.astype(jnp.float32),
    )
    return prepared, out_dim


@functools.partial(jax.jit, static_argnames=("out_dim", "tm"))
def fc_forward(x, prepared_params, *, out_dim, tm=1024):
    """Fused 3-layer MLP forward on pre-prepared params.

    Handles any B (pads batch to a multiple of the batch tile). tm=1024 keeps
    VMEM ~20 MiB (safe on v7x's 64 MiB/TC) and gives both TCs work for B>=2048;
    tiny batches collapse to a single small tile (latency-bound by design)."""
    w1b, b1f, w2b, b2f, w3b, b3f = prepared_params
    B, in_dim = x.shape
    out_pad = w3b.shape[1]
    out_dtype = x.dtype

    # Batch tile: multiple of 16 (dense bf16 vreg packing), capped at `tm`.
    tile_m = min(tm, _round_up(B, 16))
    b_pad = _round_up(B, tile_m)
    if b_pad != B:
        x = jnp.pad(x, ((0, b_pad - B), (0, 0)))

    grid = (b_pad // tile_m,)

    # VMEM budget: single-buffered resident weights/biases, double-buffered
    # f32 x/out tiles, per-layer activation temporaries, plus headroom for
    # Mosaic internal scratch.
    x_bytes = x.dtype.itemsize
    vmem_limit = int(
        2 * (w1b.size + w2b.size + w3b.size)         # bf16 weights, 1 buffer
        + 4 * (b1f.size + b2f.size + b3f.size)       # f32 biases, 1 buffer
        + 2 * x_bytes * tile_m * in_dim              # x tiles (double-buffered)
        + 2 * 4 * tile_m * out_pad                   # f32 out tiles
        + 8 * 4 * tile_m * HIDDEN                    # activation temporaries
    ) + (8 << 20)

    flops = 2 * b_pad * (in_dim * HIDDEN + HIDDEN * HIDDEN + HIDDEN * out_pad)
    bytes_accessed = (
        x.size * x_bytes + (w1b.size + w2b.size + w3b.size) * 2
        + (b1f.size + b2f.size + b3f.size) * 4 + b_pad * out_pad * 4
    )

    resident = functools.partial(pl.BlockSpec, pipeline_mode=pl.Buffered(1))

    out = pl.pallas_call(
        mlp3_kernel,
        out_shape=jax.ShapeDtypeStruct((b_pad, out_pad), out_dtype),
        grid=grid,
        in_specs=[
            pl.BlockSpec((tile_m, in_dim), lambda i: (i, 0)),      # x (streamed)
            resident((in_dim, HIDDEN), lambda i: (0, 0)),          # w1 (resident)
            resident((1, HIDDEN), lambda i: (0, 0)),               # b1
            resident((HIDDEN, HIDDEN), lambda i: (0, 0)),          # w2
            resident((1, HIDDEN), lambda i: (0, 0)),               # b2
            resident((HIDDEN, out_pad), lambda i: (0, 0)),         # w3
            resident((1, out_pad), lambda i: (0, 0)),              # b3
        ],
        out_specs=pl.BlockSpec((tile_m, out_pad), lambda i: (i, 0)),
        compiler_params=pltpu.CompilerParams(
            dimension_semantics=("parallel",),
            vmem_limit_bytes=vmem_limit,
        ),
        cost_estimate=pl.CostEstimate(
            flops=flops, transcendentals=0, bytes_accessed=bytes_accessed),
    )(x, w1b, b1f, w2b, b2f, w3b, b3f)

    # Slice off batch and lane padding. (Callers that can consume the padded
    # (b_pad, out_pad) slab directly may skip this to save an HBM pass.)
    return out[:B, :out_dim]


def init_fc_params(key, input_dim, output_dim, hidden=HIDDEN, dtype=jnp.float32):
    """Mirrors nn.Linear default init (uniform +/- 1/sqrt(fan_in)).
    Weights stored as (in, out); biases as (1, out) for 2-D broadcasting."""
    ks = jax.random.split(key, 6)

    def linear_init(kw, kb, fan_in, fan_out):
        bound = 1.0 / jnp.sqrt(fan_in)
        w = jax.random.uniform(kw, (fan_in, fan_out), dtype, -bound, bound)
        b = jax.random.uniform(kb, (1, fan_out), dtype, -bound, bound)
        return w, b

    w1, b1 = linear_init(ks[0], ks[1], input_dim, hidden)
    w2, b2 = linear_init(ks[2], ks[3], hidden, hidden)
    w3, b3 = linear_init(ks[4], ks[5], hidden, output_dim)
    return (w1, b1, w2, b2, w3, b3)


def fc_reference(x, params):
    w1, b1, w2, b2, w3, b3 = params
    h = jnp.maximum(x @ w1 + b1, 0.0)
    h = jnp.maximum(h @ w2 + b2, 0.0)
    return h @ w3 + b3


if __name__ == "__main__":
    batch, input_dim, output_dim = 8, 32, 16
    key = jax.random.PRNGKey(0)
    kx, kp = jax.random.split(key)
    x = jax.random.normal(kx, (batch, input_dim), jnp.float32)
    params = init_fc_params(kp, input_dim, output_dim)

    # One-time weight prep (bf16 cast + lane padding) outside the hot path.
    prepared, out_dim = prepare_params(params)
    prepared = jax.block_until_ready(prepared)

    out = jax.block_until_ready(fc_forward(x, prepared, out_dim=out_dim))
    ref = fc_reference(x, params)

    assert out.shape == (batch, output_dim), out.shape
    # bf16 matmul operands (f32 accumulation) => loosened tolerance vs f32 ref.
    assert jnp.allclose(out, ref, atol=5e-2, rtol=5e-2), "mismatch vs reference"

    # Also exercise a larger, non-multiple batch to check tiling/padding path.
    x_big = jax.random.normal(kx, (1000, input_dim), jnp.float32)
    out_big = jax.block_until_ready(fc_forward(x_big, prepared, out_dim=out_dim))
    ref_big = fc_reference(x_big, params)
    assert out_big.shape == (1000, output_dim), out_big.shape
    assert jnp.allclose(out_big, ref_big, atol=5e-2, rtol=5e-2), "big-batch mismatch"

    # Multi-tile batch path (grid > 1, exercises megacore sharding + padding).
    x_huge = jax.random.normal(kx, (2500, input_dim), jnp.float32)
    out_huge = jax.block_until_ready(fc_forward(x_huge, prepared, out_dim=out_dim))
    ref_huge = fc_reference(x_huge, params)
    assert out_huge.shape == (2500, output_dim), out_huge.shape
    assert jnp.allclose(out_huge, ref_huge, atol=5e-2, rtol=5e-2), "huge-batch mismatch"

    print("KERNEL_OK")
</pallas_src>

<mosaic_0001>
module attributes {stable_mosaic.version = 11 : i64} {
  func.func @mlp3_kernel(%arg0: i32, %arg1: memref<16x32xf32, #tpu.memory_space<vmem>>, %arg2: memref<32x512xbf16, #tpu.memory_space<vmem>>, %arg3: memref<1x512xf32, #tpu.memory_space<vmem>>, %arg4: memref<512x512xbf16, #tpu.memory_space<vmem>>, %arg5: memref<1x512xf32, #tpu.memory_space<vmem>>, %arg6: memref<512x128xbf16, #tpu.memory_space<vmem>>, %arg7: memref<1x128xf32, #tpu.memory_space<vmem>>, %arg8: memref<16x128xf32, #tpu.memory_space<vmem>>) attributes {dimension_semantics = [#tpu.dimension_semantics<parallel>], iteration_bounds = array<i64: 1>, scalar_prefetch = 0 : i64, scratch_operands = 0 : i64, tpu.core_type = #tpu.core_type<tc>, window_params = [{transform_indices = @transform_0, window_bounds = array<i64: 16, 32>}, {pipeline_mode = #tpu.pipeline_mode<synchronous>, transform_indices = @transform_1, window_bounds = array<i64: 32, 512>}, {pipeline_mode = #tpu.pipeline_mode<synchronous>, transform_indices = @transform_2, window_bounds = array<i64: 1, 512>}, {pipeline_mode = #tpu.pipeline_mode<synchronous>, transform_indices = @transform_3, window_bounds = array<i64: 512, 512>}, {pipeline_mode = #tpu.pipeline_mode<synchronous>, transform_indices = @transform_4, window_bounds = array<i64: 1, 512>}, {pipeline_mode = #tpu.pipeline_mode<synchronous>, transform_indices = @transform_5, window_bounds = array<i64: 512, 128>}, {pipeline_mode = #tpu.pipeline_mode<synchronous>, transform_indices = @transform_6, window_bounds = array<i64: 1, 128>}, {transform_indices = @transform_7, window_bounds = array<i64: 16, 128>}]} {
    %c0 = arith.constant 0 : index
    %c0_0 = arith.constant 0 : index
    %0 = vector.load %arg1[%c0, %c0_0] : memref<16x32xf32, #tpu.memory_space<vmem>>, vector<16x32xf32>
    %1 = arith.truncf %0 : vector<16x32xf32> to vector<16x32xbf16>
    %c0_1 = arith.constant 0 : index
    %c0_2 = arith.constant 0 : index
    %2 = vector.load %arg2[%c0_1, %c0_2] : memref<32x512xbf16, #tpu.memory_space<vmem>>, vector<32x512xbf16>
    %cst = arith.constant dense<0.000000e+00> : vector<16x512xf32>
    %3 = tpu.matmul %1, %2, %cst {dimension_numbers = #tpu.dot_dimension_numbers<[1], [0], [0], [1], [0, 0, 1, 1], [], []>} : vector<16x32xbf16>, vector<32x512xbf16>, vector<16x512xf32> -> vector<16x512xf32>
    %c0_3 = arith.constant 0 : index
    %c0_4 = arith.constant 0 : index
    %4 = vector.load %arg3[%c0_3, %c0_4] : memref<1x512xf32, #tpu.memory_space<vmem>>, vector<1x512xf32>
    %5 = vector.broadcast %4 : vector<1x512xf32> to vector<16x512xf32>
    %6 = arith.addf %3, %5 : vector<16x512xf32>
    %cst_5 = arith.constant 0.000000e+00 : f32
    %7 = vector.broadcast %cst_5 : f32 to vector<16x512xf32>
    %8 = arith.maximumf %6, %7 : vector<16x512xf32>
    %9 = arith.truncf %8 : vector<16x512xf32> to vector<16x512xbf16>
    %c0_6 = arith.constant 0 : index
    %c0_7 = arith.constant 0 : index
    %10 = vector.load %arg4[%c0_6, %c0_7] : memref<512x512xbf16, #tpu.memory_space<vmem>>, vector<512x512xbf16>
    %cst_8 = arith.constant dense<0.000000e+00> : vector<16x512xf32>
    %11 = tpu.matmul %9, %10, %cst_8 {dimension_numbers = #tpu.dot_dimension_numbers<[1], [0], [0], [1], [0, 0, 1, 1], [], []>} : vector<16x512xbf16>, vector<512x512xbf16>, vector<16x512xf32> -> vector<16x512xf32>
    %c0_9 = arith.constant 0 : index
    %c0_10 = arith.constant 0 : index
    %12 = vector.load %arg5[%c0_9, %c0_10] : memref<1x512xf32, #tpu.memory_space<vmem>>, vector<1x512xf32>
    %13 = vector.broadcast %12 : vector<1x512xf32> to vector<16x512xf32>
    %14 = arith.addf %11, %13 : vector<16x512xf32>
    %cst_11 = arith.constant 0.000000e+00 : f32
    %15 = vector.broadcast %cst_11 : f32 to vector<16x512xf32>
    %16 = arith.maximumf %14, %15 : vector<16x512xf32>
    %17 = arith.truncf %16 : vector<16x512xf32> to vector<16x512xbf16>
    %c0_12 = arith.constant 0 : index
    %c0_13 = arith.constant 0 : index
    %18 = vector.load %arg6[%c0_12, %c0_13] : memref<512x128xbf16, #tpu.memory_space<vmem>>, vector<512x128xbf16>
    %cst_14 = arith.constant dense<0.000000e+00> : vector<16x128xf32>
    %19 = tpu.matmul %17, %18, %cst_14 {dimension_numbers = #tpu.dot_dimension_numbers<[1], [0], [0], [1], [0, 0, 1, 1], [], []>} : vector<16x512xbf16>, vector<512x128xbf16>, vector<16x128xf32> -> vector<16x128xf32>
    %c0_15 = arith.constant 0 : index
    %c0_16 = arith.constant 0 : index
    %20 = vector.load %arg7[%c0_15, %c0_16] : memref<1x128xf32, #tpu.memory_space<vmem>>, vector<1x128xf32>
    %21 = vector.broadcast %20 : vector<1x128xf32> to vector<16x128xf32>
    %22 = arith.addf %19, %21 : vector<16x128xf32>
    %c0_17 = arith.constant 0 : index
    %c0_18 = arith.constant 0 : index
    %23 = vector.load %arg8[%c0_17, %c0_18] : memref<16x128xf32, #tpu.memory_space<vmem>>, vector<16x128xf32>
    tpu.vector_store %arg8[%c0_17, %c0_18], %22 {strides = array<i32>} : memref<16x128xf32, #tpu.memory_space<vmem>>, vector<16x128xf32>,
    return
  }
  func.func @transform_0(%arg0: i32) -> (i32, i32) {
    %c0_i32 = arith.constant 0 : i32
    %c0_i32_0 = arith.constant 0 : i32
    return %arg0, %c0_i32 : i32, i32
  }
  func.func @transform_1(%arg0: i32) -> (i32, i32) {
    %c0_i32 = arith.constant 0 : i32
    %c0_i32_0 = arith.constant 0 : i32
    %c0_i32_1 = arith.constant 0 : i32
    return %c0_i32, %c0_i32_0 : i32, i32
  }
  func.func @transform_2(%arg0: i32) -> (i32, i32) {
    %c0_i32 = arith.constant 0 : i32
    %c0_i32_0 = arith.constant 0 : i32
    %c0_i32_1 = arith.constant 0 : i32
    return %c0_i32, %c0_i32_0 : i32, i32
  }
  func.func @transform_3(%arg0: i32) -> (i32, i32) {
    %c0_i32 = arith.constant 0 : i32
    %c0_i32_0 = arith.constant 0 : i32
    %c0_i32_1 = arith.constant 0 : i32
    return %c0_i32, %c0_i32_0 : i32, i32
  }
  func.func @transform_4(%arg0: i32) -> (i32, i32) {
    %c0_i32 = arith.constant 0 : i32
    %c0_i32_0 = arith.constant 0 : i32
    %c0_i32_1 = arith.constant 0 : i32
    return %c0_i32, %c0_i32_0 : i32, i32
  }
  func.func @transform_5(%arg0: i32) -> (i32, i32) {
    %c0_i32 = arith.constant 0 : i32
    %c0_i32_0 = arith.constant 0 : i32
    %c0_i32_1 = arith.constant 0 : i32
    return %c0_i32, %c0_i32_0 : i32, i32
  }
  func.func @transform_6(%arg0: i32) -> (i32, i32) {
    %c0_i32 = arith.constant 0 : i32
    %c0_i32_0 = arith.constant 0 : i32
    %c0_i32_1 = arith.constant 0 : i32
    return %c0_i32, %c0_i32_0 : i32, i32
  }
  func.func @transform_7(%arg0: i32) -> (i32, i32) {
    %c0_i32 = arith.constant 0 : i32
    %c0_i32_0 = arith.constant 0 : i32
    return %arg0, %c0_i32 : i32, i32
  }
}

</mosaic_0001>

<bundles_post_ra>
// kernel: fc_forward.1
= control target key start
LH: loop header
LB: loop body
LE: loop exit
PB: predicated region body
PF: predicated region fallthrough
CT: control target
= control target key end

     0   :  { %12 = vsyncpa [#allocation3], 0  ;;  %s2584_s0 = inlined_call_operand.vmem [shape: f32[16,32], index: 0, kind: input, shape index: {}]   ;;  %s2585_s1 = inlined_call_operand.hbm [shape: bf16[32,512], index: 1, kind: input, shape index: {}]   ;;  %s2586_s2 = inlined_call_operand.vmem [shape: f32[1,512], index: 2, kind: input, shape index: {}]   ;;  %s2587_s3 = inlined_call_operand.hbm [shape: bf16[512,512], index: 3, kind: input, shape index: {}]   ;;  %s2588_s4 = inlined_call_operand.vmem [shape: f32[1,512], index: 4, kind: input, shape index: {}]   ;;  %s2589_s5 = inlined_call_operand.hbm [shape: bf16[512,128], index: 5, kind: input, shape index: {}]   ;;  %s2590_s6 = inlined_call_operand.vmem [shape: f32[1,128], index: 6, kind: input, shape index: {}]   ;;  %s2591_s7 = inlined_call_operand.vmem [shape: f32[16,128], index: 7, kind: output, shape index: {}]  }
   0x1   :  { %13 = vsyncpa [#allocation5], 0  ;;  %s35_s26 = sshll.u32 %s2587_s3, 4  ;;  %s2473_s27 = smov [#allocation4]   ;;  %s36_s26 = int_to_ptr.hbm [resolvable:$true] %s35_s26 }
   0x2   :  { %s37_s28 = sshll.u32 %s2473_s27, 4  ;;  %s20_s8 = sshll.u32 %s2585_s1, 4  ;;  %s38_s28 = int_to_ptr.vmem [resolvable:$true] %s37_s28  ;;  %s21_s8 = int_to_ptr.hbm [resolvable:$true] %s20_s8 }
   0x3   :  { %s2474_s9 = smov 256   ;;  %s2475_s10 = smov 16  }
   0x4   :  { %43 = dma.hbm_to_vmem [thread:$0]  %s36_s26, 16384, %s38_s28, [#allocation5], %s2474_s9, %s2474_s9, %s2475_s10  }
   0x5   :  { %s2476_s11 = smov [#allocation2]   ;;  %s50_s15 = sshll.u32 %s2589_s5, 4  ;;  %s51_s15 = int_to_ptr.hbm [resolvable:$true] %s50_s15 }
   0x6   :  { %s22_s12 = sshll.u32 %s2476_s11, 4  ;;  %s2477_s3 = smov [#allocation6]   ;;  %s23_s12 = int_to_ptr.vmem [resolvable:$true] %s22_s12 }
   0x7   :  { %28 = dma.hbm_to_vmem [thread:$0]  %s21_s8, 1024, %s23_s12, [#allocation3], %s2474_s9, %s2474_s9, %s2475_s10  }
   0x8   :  { %s52_s16 = sshll.u32 %s2477_s3, 4  ;;  %s2478_s17 = smov 64   ;;  %s53_s16 = int_to_ptr.vmem [resolvable:$true] %s52_s16 }
   0x9   :  { %s2479_s18 = smov 4  }
   0xa   :  { %58 = dma.hbm_to_vmem [thread:$0]  %s51_s15, 4096, %s53_s16, [#allocation5], %s2478_s17, %s2478_s17, %s2479_s18  }
   0xb   :  { %2469 = dma.done.wait [#allocation3], 1024  }
   0xc   :  { %2470 = vsyncadd [#allocation3], 4294966272 }
   0xd   :  { %2471 = dma.done.wait [#allocation5], 20480  }
   0xe   :  { %2472 = vsyncadd [#allocation5], 4294946816  ;;  %v1563_v0 = vld [vmem:[#allocation2 + $0x20] sm:$0xf]  ;;  %v2227_v1 = vld [vmem:[#allocation2 + $0x2c] sm:$0xf0] }
   0xf   :  { %v2225_v2 = vld [vmem:[#allocation2 + $0x24] sm:$0xf]  ;;  %v1564_v3 = vor.u32 %v2227_v1, %v1563_v0  ;;  %v1565_v4 = vld [vmem:[#allocation2 + $0x30] sm:$0xf0]  ;;  %v1571_v5 = vld [vmem:[#allocation2 + $0x28] sm:$0xf] }
  0x10   :  { %v2228_v6 = vld [vmem:[#allocation2 + $0x34] sm:$0xf0]  ;;  %v1568_v7 = vor.u32 %v2225_v2, %v1565_v4  ;;  %v2226_v9 = vld [vmem:[#allocation2 + $0x2c] sm:$0xf]  ;;  %v1573_v10 = vld [vmem:[#allocation2 + $0x38] sm:$0xf0] }
  0x11   :  { %v1572_v8 = vor.u32 %v2228_v6, %v1571_v5  ;;  %v1547_v11 = vld [vmem:[#allocation2] sm:$0xf]  ;;  %145 = vmatpush.bf16.msra.mxu0 %v1564_v3  ;;  %v1576_v12 = vor.u32 %v2226_v9, %v1573_v10  ;;  %v2223_v13 = vld [vmem:[#allocation2 + $0xc] sm:$0xf0]  ;;  %v2221_v14 = vld [vmem:[#allocation2 + $0x4] sm:$0xf] }
  0x12   :  { %v1549_v15 = vld [vmem:[#allocation2 + $0x10] sm:$0xf0]  ;;  %159 = vmatpush.bf16.msra.mxu1 %v1568_v7  ;;  %v1548_v16 = vor.u32 %v2223_v13, %v1547_v11  ;;  %v1555_v18 = vld [vmem:[#allocation2 + $0x8] sm:$0xf]  ;;  %v2224_v19 = vld [vmem:[#allocation2 + $0x14] sm:$0xf0] }
  0x13   :  { %173 = vmatpush.bf16.msra.mxu2 %v1572_v8  ;;  %v1552_v17 = vor.u32 %v2221_v14, %v1549_v15  ;;  %v2222_v20 = vld [vmem:[#allocation2 + $0xc] sm:$0xf]  ;;  %187 = vmatpush.bf16.msra.mxu3 %v1576_v12  ;;  %v1556_v21 = vor.u32 %v2224_v19, %v1555_v18  ;;  %v1557_v22 = vld [vmem:[#allocation2 + $0x18] sm:$0xf0]  ;;  %v74_v23 = vld [vmem:[%s2584_s0] sm:$0xff]  ;;  %vm135_vm0 = vcmask 261120  }
  0x14   :  { %v75_v24 = vld [vmem:[%s2584_s0 + $0x8] sm:$0xff]  ;;  %v1560_v25 = vor.u32 %v2222_v20, %v1557_v22  ;;  %v1695_v27 = vld [vmem:[#allocation4 + $0xe0] sm:$0xf]  ;;  %v2259_v28 = vld [vmem:[#allocation4 + $0xec] sm:$0xf0] }
  0x15   :  { %v76_v26 = vpack.c.bf16 %v75_v24, %v74_v23  ;;  %v1823_v29 = vld [vmem:[#allocation4 + $0x1e0] sm:$0xf]  ;;  %146 = vmatpush.bf16.msra.mxu0 %v1548_v16  ;;  %v1696_v30 = vor.u32 %v2259_v28, %v1695_v27  ;;  %v2291_v31 = vld [vmem:[#allocation4 + $0x1ec] sm:$0xf0] }
  0x16   :  { %v1679_v32 = vld [vmem:[#allocation4 + $0xc0] sm:$0xf]  ;;  %v2255_v33 = vld [vmem:[#allocation4 + $0xcc] sm:$0xf0]  ;;  %160 = vmatpush.bf16.msra.mxu1 %v1552_v17  ;;  %v1824_v34 = vor.u32 %v2291_v31, %v1823_v29 }
  0x17   :  { %174 = vmatpush.bf16.msra.mxu2 %v1556_v21  ;;  %v1807_v35 = vld [vmem:[#allocation4 + $0x1c0] sm:$0xf]  ;;  %v2287_v36 = vld [vmem:[#allocation4 + $0x1cc] sm:$0xf0]  ;;  %188 = vmatpush.bf16.msra.mxu3 %v1560_v25  ;;  %v1680_v38 = vor.u32 %v2255_v33, %v1679_v32 }
  0x18   :  { %v1951_v37 = vld [vmem:[#allocation4 + $0x2e0] sm:$0xf]  ;;  %v2323_v39 = vld [vmem:[#allocation4 + $0x2ec] sm:$0xf0]  ;;  %1577 = vmatmul.msk.bf16.vlgmr.msra.gmra.mxu0 %vm135_vm0, %v76_v26  ;;  %v1808_v42 = vor.u32 %v2287_v36, %v1807_v35 }
  0x19   :  { %985 = vmatpush.bf16.msrb.mxu0 %v1696_v30  ;;  %v2079_v40 = vld [vmem:[#allocation4 + $0x3e0] sm:$0xf]  ;;  %v2355_v41 = vld [vmem:[#allocation4 + $0x3ec] sm:$0xf0]  ;;  %v1952_v43 = vor.u32 %v2323_v39, %v1951_v37  ;;  %1578 = vmatmul.msk.bf16.vlgmr.msra.gmra.mxu1 %vm135_vm0, %v76_v26 }
  0x1a   :  { %999 = vmatpush.bf16.msrb.mxu1 %v1824_v34  ;;  %v2080_v44 = vor.u32 %v2355_v41, %v2079_v40  ;;  %v1663_v45 = vld [vmem:[#allocation4 + $0xa0] sm:$0xf]  ;;  %v2251_v46 = vld [vmem:[#allocation4 + $0xac] sm:$0xf0]  ;;  %1579 = vmatmul.msk.bf16.vlgmr.msra.gmra.mxu2 %vm135_vm0, %v76_v26 }
  0x1b   :  { %v1791_v47 = vld [vmem:[#allocation4 + $0x1a0] sm:$0xf]  ;;  %v2283_v48 = vld [vmem:[#allocation4 + $0x1ac] sm:$0xf0]  ;;  %1580 = vmatmul.msk.bf16.vlgmr.msra.gmra.mxu3 %vm135_vm0, %v76_v26  ;;  %1013 = vmatpush.bf16.msrb.mxu2 %v1952_v43  ;;  %v1664_v54 = vor.u32 %v2251_v46, %v1663_v45 }
  0x1c   :  { %v1935_v49 = vld [vmem:[#allocation4 + $0x2c0] sm:$0xf]  ;;  %v2319_v50 = vld [vmem:[#allocation4 + $0x2cc] sm:$0xf0]  ;;  %1027 = vmatpush.bf16.msrb.mxu3 %v2080_v44  ;;  %v1792_v58 = vor.u32 %v2283_v48, %v1791_v47 }
  0x1d   :  { %v1936_v51 = vor.u32 %v2319_v50, %v1935_v49  ;;  %v2063_v52 = vld [vmem:[#allocation4 + $0x3c0] sm:$0xf]  ;;  %v2351_v53 = vld [vmem:[#allocation4 + $0x3cc] sm:$0xf0]  ;;  %986 = vmatpush.bf16.msrb.mxu0 %v1680_v38  ;;  %v2257_v49 = vld [vmem:[#allocation4 + $0xe4] sm:$0xf] }
  0x1e   :  { %v2064_v55 = vor.u32 %v2351_v53, %v2063_v52  ;;  %v1647_v56 = vld [vmem:[#allocation4 + $0x80] sm:$0xf]  ;;  %v2247_v57 = vld [vmem:[#allocation4 + $0x8c] sm:$0xf0]  ;;  %1000 = vmatpush.bf16.msrb.mxu1 %v1808_v42  ;;  %v1697_v50 = vld [vmem:[#allocation4 + $0xf0] sm:$0xf0] }
  0x1f   :  { %v1919_v59 = vld [vmem:[#allocation4 + $0x2a0] sm:$0xf]  ;;  %v2315_v60 = vld [vmem:[#allocation4 + $0x2ac] sm:$0xf0]  ;;  %1014 = vmatpush.bf16.msrb.mxu2 %v1936_v51  ;;  %v1648_v2 = vor.u32 %v2247_v57, %v1647_v56  ;;  %v2289_v51 = vld [vmem:[#allocation4 + $0x1e4] sm:$0xf] }
  0x20   :  { %v2047_v61 = vld [vmem:[#allocation4 + $0x3a0] sm:$0xf]  ;;  %v2279_v63 = vld [vmem:[#allocation4 + $0x18c] sm:$0xf0]  ;;  %v1920_v1 = vor.u32 %v2315_v60, %v1919_v59  ;;  %1028 = vmatpush.bf16.msrb.mxu3 %v2064_v55  ;;  %v1825_v52 = vld [vmem:[#allocation4 + $0x1f0] sm:$0xf0] }
  0x21   :  { %v1775_v62 = vld [vmem:[#allocation4 + $0x180] sm:$0xf]  ;;  %v2347_v0 = vld [vmem:[#allocation4 + $0x3ac] sm:$0xf0]  ;;  %987 = vmatpush.bf16.msrb.mxu0 %v1664_v54  ;;  %v2253_v56 = vld [vmem:[#allocation4 + $0xc4] sm:$0xf] }
  0x22   :  { %v2048_v3 = vor.u32 %v2347_v0, %v2047_v61  ;;  %v1631_v4 = vld [vmem:[#allocation4 + $0x60] sm:$0xf]  ;;  %v2311_v6 = vld [vmem:[#allocation4 + $0x28c] sm:$0xf0]  ;;  %1001 = vmatpush.bf16.msrb.mxu1 %v1792_v58  ;;  %v1776_v7 = vor.u32 %v2279_v63, %v1775_v62  ;;  %v1681_v57 = vld [vmem:[#allocation4 + $0xd0] sm:$0xf0]  ;;  %v1700_v62 = vor.u32 %v2257_v49, %v1697_v50 }
  0x23   :  { %v1903_v5 = vld [vmem:[#allocation4 + $0x280] sm:$0xf]  ;;  %v2243_v8 = vld [vmem:[#allocation4 + $0x6c] sm:$0xf0]  ;;  %1015 = vmatpush.bf16.msrb.mxu2 %v1920_v1  ;;  %v2321_v0 = vld [vmem:[#allocation4 + $0x2e4] sm:$0xf] }
  0x24   :  { %v2031_v9 = vld [vmem:[#allocation4 + $0x380] sm:$0xf]  ;;  %v2343_v10 = vld [vmem:[#allocation4 + $0x38c] sm:$0xf0]  ;;  %v1904_v13 = vor.u32 %v2311_v6, %v1903_v5  ;;  %1029 = vmatpush.bf16.msrb.mxu3 %v2048_v3  ;;  %v1632_v14 = vor.u32 %v2243_v8, %v1631_v4  ;;  %v1953_v1 = vld [vmem:[#allocation4 + $0x2f0] sm:$0xf0] }
  0x25   :  { %v1759_v11 = vld [vmem:[#allocation4 + $0x160] sm:$0xf]  ;;  %v2275_v12 = vld [vmem:[#allocation4 + $0x16c] sm:$0xf0]  ;;  %988 = vmatpush.bf16.msrb.mxu0 %v1648_v2  ;;  %v2032_v15 = vor.u32 %v2343_v10, %v2031_v9  ;;  %v1828_v2 = vor.u32 %v2289_v51, %v1825_v52  ;;  %v2353_v3 = vld [vmem:[#allocation4 + $0x3e4] sm:$0xf]  ;;  %v1956_v9 = vor.u32 %v2321_v0, %v1953_v1  ;;  %v1684_v10 = vor.u32 %v2253_v56, %v1681_v57 }
  0x26   :  { %v1615_v16 = vld [vmem:[#allocation4 + $0x40] sm:$0xf]  ;;  %v2307_v18 = vld [vmem:[#allocation4 + $0x26c] sm:$0xf0]  ;;  %1002 = vmatpush.bf16.msrb.mxu1 %v1776_v7  ;;  %v1760_v19 = vor.u32 %v2275_v12, %v1759_v11  ;;  %v2081_v4 = vld [vmem:[#allocation4 + $0x3f0] sm:$0xf0] }
  0x27   :  { %v1887_v17 = vld [vmem:[#allocation4 + $0x260] sm:$0xf]  ;;  %v2239_v20 = vld [vmem:[#allocation4 + $0x4c] sm:$0xf0]  ;;  %1016 = vmatpush.bf16.msrb.mxu2 %v1904_v13  ;;  %v2285_v5 = vld [vmem:[#allocation4 + $0x1c4] sm:$0xf]  ;;  %v2084_v11 = vor.u32 %v2353_v3, %v2081_v4 }
  0x28   :  { %v2015_v21 = vld [vmem:[#allocation4 + $0x360] sm:$0xf]  ;;  %v2339_v22 = vld [vmem:[#allocation4 + $0x36c] sm:$0xf0]  ;;  %v1888_v25 = vor.u32 %v2307_v18, %v1887_v17  ;;  %1030 = vmatpush.bf16.msrb.mxu3 %v2032_v15  ;;  %v1616_v26 = vor.u32 %v2239_v20, %v1615_v16  ;;  %v1809_v6 = vld [vmem:[#allocation4 + $0x1d0] sm:$0xf0] }
  0x29   :  { %v1743_v23 = vld [vmem:[#allocation4 + $0x140] sm:$0xf]  ;;  %v2271_v24 = vld [vmem:[#allocation4 + $0x14c] sm:$0xf0]  ;;  %989 = vmatpush.bf16.msrb.mxu0 %v1632_v14  ;;  %v2016_v27 = vor.u32 %v2339_v22, %v2015_v21  ;;  %v2249_v12 = vld [vmem:[#allocation4 + $0xa4] sm:$0xf]  ;;  %v1812_v15 = vor.u32 %v2285_v5, %v1809_v6 }
  0x2a   :  { %v1599_v28 = vld [vmem:[#allocation4 + $0x20] sm:$0xf]  ;;  %v2303_v30 = vld [vmem:[#allocation4 + $0x24c] sm:$0xf0]  ;;  %1003 = vmatpush.bf16.msrb.mxu1 %v1760_v19  ;;  %v1744_v31 = vor.u32 %v2271_v24, %v1743_v23  ;;  %v2317_v13 = vld [vmem:[#allocation4 + $0x2c4] sm:$0xf] }
  0x2b   :  { %v1871_v29 = vld [vmem:[#allocation4 + $0x240] sm:$0xf]  ;;  %v2235_v32 = vld [vmem:[#allocation4 + $0x2c] sm:$0xf0]  ;;  %1017 = vmatpush.bf16.msrb.mxu2 %v1888_v25  ;;  %v1937_v14 = vld [vmem:[#allocation4 + $0x2d0] sm:$0xf0] }
  0x2c   :  { %v1999_v33 = vld [vmem:[#allocation4 + $0x340] sm:$0xf]  ;;  %v2335_v34 = vld [vmem:[#allocation4 + $0x34c] sm:$0xf0]  ;;  %v1872_v37 = vor.u32 %v2303_v30, %v1871_v29  ;;  %1031 = vmatpush.bf16.msrb.mxu3 %v2016_v27  ;;  %v1600_v39 = vor.u32 %v2235_v32, %v1599_v28  ;;  %v1665_v16 = vld [vmem:[#allocation4 + $0xb0] sm:$0xf0]  ;;  %v1940_v21 = vor.u32 %v2317_v13, %v1937_v14 }
  0x2d   :  { %v1727_v35 = vld [vmem:[#allocation4 + $0x120] sm:$0xf]  ;;  %v2267_v36 = vld [vmem:[#allocation4 + $0x12c] sm:$0xf0]  ;;  %990 = vmatpush.bf16.msrb.mxu0 %v1616_v26  ;;  %v2000_v40 = vor.u32 %v2335_v34, %v1999_v33  ;;  %v2349_v17 = vld [vmem:[#allocation4 + $0x3c4] sm:$0xf]  ;;  %v1668_v22 = vor.u32 %v2249_v12, %v1665_v16 }
  0x2e   :  { %v1583_v38 = vld [vmem:[#allocation4] sm:$0xf]  ;;  %v2231_v41 = vld [vmem:[#allocation4 + $0xc] sm:$0xf0]  ;;  %1004 = vmatpush.bf16.msrb.mxu1 %v1744_v31  ;;  %v1728_v44 = vor.u32 %v2267_v36, %v1727_v35  ;;  %v2065_v18 = vld [vmem:[#allocation4 + $0x3d0] sm:$0xf0] }
  0x2f   :  { %v1855_v42 = vld [vmem:[#allocation4 + $0x220] sm:$0xf]  ;;  %v2299_v43 = vld [vmem:[#allocation4 + $0x22c] sm:$0xf0]  ;;  %1018 = vmatpush.bf16.msrb.mxu2 %v1872_v37  ;;  %v1584_v54 = vor.u32 %v2231_v41, %v1583_v38  ;;  %v2281_v19 = vld [vmem:[#allocation4 + $0x1a4] sm:$0xf]  ;;  %v2068_v23 = vor.u32 %v2349_v17, %v2065_v18 }
  0x30   :  { %v1711_v45 = vld [vmem:[#allocation4 + $0x100] sm:$0xf]  ;;  %v2331_v47 = vld [vmem:[#allocation4 + $0x32c] sm:$0xf0]  ;;  %v1856_v53 = vor.u32 %v2299_v43, %v1855_v42  ;;  %1032 = vmatpush.bf16.msrb.mxu3 %v2000_v40  ;;  %v1793_v20 = vld [vmem:[#allocation4 + $0x1b0] sm:$0xf0] }
  0x31   :  { %v1983_v46 = vld [vmem:[#allocation4 + $0x320] sm:$0xf]  ;;  %v2263_v48 = vld [vmem:[#allocation4 + $0x10c] sm:$0xf0]  ;;  %991 = vmatpush.bf16.msrb.mxu0 %v1600_v39  ;;  %v1796_v24 = vor.u32 %v2281_v19, %v1793_v20  ;;  %v2245_v25 = vld [vmem:[#allocation4 + $0x84] sm:$0xf] }
  0x32   :  { %v1984_v55 = vor.u32 %v2331_v47, %v1983_v46  ;;  %v1839_v58 = vld [vmem:[#allocation4 + $0x200] sm:$0xf]  ;;  %v2295_v59 = vld [vmem:[#allocation4 + $0x20c] sm:$0xf0]  ;;  %1005 = vmatpush.bf16.msrb.mxu1 %v1728_v44  ;;  %v1712_v61 = vor.u32 %v2263_v48, %v1711_v45  ;;  %v1649_v26 = vld [vmem:[#allocation4 + $0x90] sm:$0xf0] }
  0x33   :  { %v1967_v60 = vld [vmem:[#allocation4 + $0x300] sm:$0xf]  ;;  %v2327_v63 = vld [vmem:[#allocation4 + $0x30c] sm:$0xf0]  ;;  %1019 = vmatpush.bf16.msrb.mxu2 %v1856_v53  ;;  %v1840_v7 = vor.u32 %v2295_v59, %v1839_v58  ;;  %v2277_v27 = vld [vmem:[#allocation4 + $0x184] sm:$0xf]  ;;  %v1652_v29 = vor.u32 %v2245_v25, %v1649_v26 }
  0x34   :  { %1033 = vmatpush.bf16.msrb.mxu3 %v1984_v55  ;;  %v1968_v8 = vor.u32 %v2327_v63, %v1967_v60  ;;  %v1777_v28 = vld [vmem:[#allocation4 + $0x190] sm:$0xf0]  ;;  %v2313_v31 = vld [vmem:[#allocation4 + $0x2a4] sm:$0xf] }
  0x35   :  { %992 = vmatpush.bf16.msrb.mxu0 %v1584_v54  ;;  %v1780_v30 = vor.u32 %v2277_v27, %v1777_v28  ;;  %v1921_v32 = vld [vmem:[#allocation4 + $0x2b0] sm:$0xf0]  ;;  %v2345_v33 = vld [vmem:[#allocation4 + $0x3a4] sm:$0xf]  ;;  %v85_v27 = vld [vmem:[%s2586_s2] sm:$0xf] }
  0x36   :  { %1006 = vmatpush.bf16.msrb.mxu1 %v1712_v61  ;;  %v1924_v34 = vor.u32 %v2313_v31, %v1921_v32  ;;  %v2049_v35 = vld [vmem:[#allocation4 + $0x3b0] sm:$0xf0]  ;;  %v2241_v37 = vld [vmem:[#allocation4 + $0x64] sm:$0xf]  ;;  %v88_v31 = vperm.slane %v85_v27, 1 }
  0x37   :  { %1020 = vmatpush.bf16.msrb.mxu2 %v1840_v7  ;;  %v2052_v36 = vor.u32 %v2345_v33, %v2049_v35  ;;  %v1633_v38 = vld [vmem:[#allocation4 + $0x70] sm:$0xf0]  ;;  %v2273_v39 = vld [vmem:[#allocation4 + $0x164] sm:$0xf] }
  0x38   :  { %1034 = vmatpush.bf16.msrb.mxu3 %v1968_v8  ;;  %v1636_v40 = vor.u32 %v2241_v37, %v1633_v38  ;;  %v1761_v41 = vld [vmem:[#allocation4 + $0x170] sm:$0xf0]  ;;  %v2309_v43 = vld [vmem:[#allocation4 + $0x284] sm:$0xf] }
  0x39   :  { %1041 = vmatpush.bf16.msra.mxu0 %v1700_v62  ;;  %v1764_v42 = vor.u32 %v2273_v39, %v1761_v41  ;;  %v1905_v44 = vld [vmem:[#allocation4 + $0x290] sm:$0xf0]  ;;  %v2341_v46 = vld [vmem:[#allocation4 + $0x384] sm:$0xf]  ;;  %v2260_v41 = vld [vmem:[#allocation4 + $0xf4] sm:$0xf0] }
  0x3a   :  { %1055 = vmatpush.bf16.msra.mxu1 %v1828_v2  ;;  %v1908_v45 = vor.u32 %v2309_v43, %v1905_v44  ;;  %v2033_v47 = vld [vmem:[#allocation4 + $0x390] sm:$0xf0]  ;;  %v2237_v49 = vld [vmem:[#allocation4 + $0x44] sm:$0xf]  ;;  %v89_v43 = vperm.slane %v85_v27, 2 }
  0x3b   :  { %1069 = vmatpush.bf16.msra.mxu2 %v1956_v9  ;;  %v2036_v48 = vor.u32 %v2341_v46, %v2033_v47  ;;  %v1617_v50 = vld [vmem:[#allocation4 + $0x50] sm:$0xf0]  ;;  %v2269_v51 = vld [vmem:[#allocation4 + $0x144] sm:$0xf]  ;;  %v2292_v46 = vld [vmem:[#allocation4 + $0x1f4] sm:$0xf0] }
  0x3c   :  { %1083 = vmatpush.bf16.msra.mxu3 %v2084_v11  ;;  %v1620_v52 = vor.u32 %v2237_v49, %v1617_v50  ;;  %v1745_v53 = vld [vmem:[#allocation4 + $0x150] sm:$0xf0]  ;;  %v2305_v55 = vld [vmem:[#allocation4 + $0x264] sm:$0xf]  ;;  %v90_v47 = vperm.slane %v85_v27, 3 }
  0x3d   :  { %1042 = vmatpush.bf16.msra.mxu0 %v1684_v10  ;;  %v1748_v54 = vor.u32 %v2269_v51, %v1745_v53  ;;  %v1889_v56 = vld [vmem:[#allocation4 + $0x270] sm:$0xf0]  ;;  %v2337_v57 = vld [vmem:[#allocation4 + $0x364] sm:$0xf]  ;;  %v1687_v53 = vld [vmem:[#allocation4 + $0xc8] sm:$0xf] }
  0x3e   :  { %1056 = vmatpush.bf16.msra.mxu1 %v1812_v15  ;;  %v1892_v58 = vor.u32 %v2305_v55, %v1889_v56  ;;  %v2017_v59 = vld [vmem:[#allocation4 + $0x370] sm:$0xf0]  ;;  %v2233_v61 = vld [vmem:[#allocation4 + $0x24] sm:$0xf] }
  0x3f   :  { %1070 = vmatpush.bf16.msra.mxu2 %v1940_v21  ;;  %v2020_v60 = vor.u32 %v2337_v57, %v2017_v59  ;;  %v1601_v62 = vld [vmem:[#allocation4 + $0x30] sm:$0xf0]  ;;  %v2265_v0 = vld [vmem:[#allocation4 + $0x124] sm:$0xf]  ;;  %v1815_v57 = vld [vmem:[#allocation4 + $0x1c8] sm:$0xf] }
  0x40   :  { %1084 = vmatpush.bf16.msra.mxu3 %v2068_v23  ;;  %v1604_v63 = vor.u32 %v2233_v61, %v1601_v62  ;;  %v1729_v1 = vld [vmem:[#allocation4 + $0x130] sm:$0xf0]  ;;  %v2301_v3 = vld [vmem:[#allocation4 + $0x244] sm:$0xf] }
  0x41   :  { %1043 = vmatpush.bf16.msra.mxu0 %v1668_v22  ;;  %v1732_v2 = vor.u32 %v2265_v0, %v1729_v1  ;;  %v1873_v4 = vld [vmem:[#allocation4 + $0x250] sm:$0xf0]  ;;  %v2333_v5 = vld [vmem:[#allocation4 + $0x344] sm:$0xf]  ;;  %v1959_v0 = vld [vmem:[#allocation4 + $0x2e8] sm:$0xf] }
  0x42   :  { %1057 = vmatpush.bf16.msra.mxu1 %v1796_v24  ;;  %v1876_v6 = vor.u32 %v2301_v3, %v1873_v4  ;;  %v2001_v7 = vld [vmem:[#allocation4 + $0x350] sm:$0xf0]  ;;  %v2229_v9 = vld [vmem:[#allocation4 + $0x4] sm:$0xf]  ;;  %v2324_v1 = vld [vmem:[#allocation4 + $0x2f4] sm:$0xf0] }
  0x43   :  { %1071 = vmatpush.bf16.msra.mxu2 %v1924_v34  ;;  %v2004_v8 = vor.u32 %v2333_v5, %v2001_v7  ;;  %v1585_v10 = vld [vmem:[#allocation4 + $0x10] sm:$0xf0]  ;;  %v2261_v11 = vld [vmem:[#allocation4 + $0x104] sm:$0xf]  ;;  %v2356_v5 = vld [vmem:[#allocation4 + $0x3f4] sm:$0xf0] }
  0x44   :  { %1085 = vmatpush.bf16.msra.mxu3 %v2052_v36  ;;  %v1588_v12 = vor.u32 %v2229_v9, %v1585_v10  ;;  %v1713_v13 = vld [vmem:[#allocation4 + $0x110] sm:$0xf0]  ;;  %v2297_v15 = vld [vmem:[#allocation4 + $0x224] sm:$0xf]  ;;  %v2252_v7 = vld [vmem:[#allocation4 + $0xb4] sm:$0xf0] }
  0x45   :  { %1044 = vmatpush.bf16.msra.mxu0 %v1652_v29  ;;  %v1716_v14 = vor.u32 %v2261_v11, %v1713_v13  ;;  %v1857_v16 = vld [vmem:[#allocation4 + $0x230] sm:$0xf0]  ;;  %v2329_v17 = vld [vmem:[#allocation4 + $0x324] sm:$0xf]  ;;  %v87_v29 = vperm.slane %v85_v27, 0 }
  0x46   :  { %1058 = vmatpush.bf16.msra.mxu1 %v1780_v30  ;;  %v1985_v18 = vld [vmem:[#allocation4 + $0x330] sm:$0xf0]  ;;  %v1860_v19 = vor.u32 %v2297_v15, %v1857_v16  ;;  %v2293_v21 = vld [vmem:[#allocation4 + $0x204] sm:$0xf]  ;;  %v1799_v10 = vld [vmem:[#allocation4 + $0x1a8] sm:$0xf] }
  0x47   :  { %1072 = vmatpush.bf16.msra.mxu2 %v1908_v45  ;;  %v1988_v20 = vor.u32 %v2329_v17, %v1985_v18  ;;  %v1841_v22 = vld [vmem:[#allocation4 + $0x210] sm:$0xf0]  ;;  %v2325_v24 = vld [vmem:[#allocation4 + $0x304] sm:$0xf]  ;;  %v1831_v45 = vld [vmem:[#allocation4 + $0x1e8] sm:$0xf] }
  0x48   :  { %1086 = vmatpush.bf16.msra.mxu3 %v2036_v48  ;;  %v1844_v23 = vor.u32 %v2293_v21, %v1841_v22  ;;  %v1969_v25 = vld [vmem:[#allocation4 + $0x310] sm:$0xf0]  ;;  %v2284_v11 = vld [vmem:[#allocation4 + $0x1b4] sm:$0xf0]  ;;  %v1943_v18 = vld [vmem:[#allocation4 + $0x2c8] sm:$0xf] }
  0x49   :  { %1045 = vmatpush.bf16.msra.mxu0 %v1636_v40  ;;  %v1972_v26 = vor.u32 %v2325_v24, %v1969_v25  ;;  %v1703_v40 = vld [vmem:[#allocation4 + $0xe8] sm:$0xf]  ;;  %v1800_v22 = vor.u32 %v2284_v11, %v1799_v10  ;;  %v2248_v25 = vld [vmem:[#allocation4 + $0x94] sm:$0xf0] }
  0x4a   :  { %1059 = vmatpush.bf16.msra.mxu1 %v1764_v42  ;;  %v1704_v50 = vor.u32 %v2260_v41, %v1703_v40  ;;  %v1655_v24 = vld [vmem:[#allocation4 + $0x88] sm:$0xf]  ;;  %v2280_v27 = vld [vmem:[#allocation4 + $0x194] sm:$0xf0] }
  0x4b   :  { %1073 = vmatpush.bf16.msra.mxu2 %v1892_v58  ;;  %v2288_v58 = vld [vmem:[#allocation4 + $0x1d4] sm:$0xf0]  ;;  %v1591_v10 = vld [vmem:[#allocation4 + $0x8] sm:$0xf] }
  0x4c   :  { %1087 = vmatpush.bf16.msra.mxu3 %v2020_v60  ;;  %v1816_v4 = vor.u32 %v2288_v58, %v1815_v57  ;;  %v2308_v57 = vld [vmem:[#allocation4 + $0x274] sm:$0xf0] }
  0x4d   :  { %1046 = vmatpush.bf16.msra.mxu0 %v1620_v52  ;;  %v1832_v52 = vor.u32 %v2292_v46, %v1831_v45  ;;  %v2039_v46 = vld [vmem:[#allocation4 + $0x388] sm:$0xf]  ;;  %v2232_v11 = vld [vmem:[#allocation4 + $0x14] sm:$0xf0] }
  0x4e   :  { %1060 = vmatpush.bf16.msra.mxu1 %v1748_v54  ;;  %v2256_v54 = vld [vmem:[#allocation4 + $0xd4] sm:$0xf0] }
  0x4f   :  { %1074 = vmatpush.bf16.msra.mxu2 %v1876_v6  ;;  %v1671_v6 = vld [vmem:[#allocation4 + $0xa8] sm:$0xf] }
  0x50   :  { %1088 = vmatpush.bf16.msra.mxu3 %v2004_v8  ;;  %v1672_v17 = vor.u32 %v2252_v7, %v1671_v6  ;;  %v2007_v6 = vld [vmem:[#allocation4 + $0x348] sm:$0xf] }
  0x51   :  { %1047 = vmatpush.bf16.msra.mxu0 %v1604_v63  ;;  %v1688_v63 = vor.u32 %v2256_v54, %v1687_v53 }
  0x52   :  { %1061 = vmatpush.bf16.msra.mxu1 %v1732_v2  ;;  %v2087_v2 = vld [vmem:[#allocation4 + $0x3e8] sm:$0xf] }
  0x53   :  { %1075 = vmatpush.bf16.msra.mxu2 %v1860_v19  ;;  %v2088_v16 = vor.u32 %v2356_v5, %v2087_v2  ;;  %v2320_v19 = vld [vmem:[#allocation4 + $0x2d4] sm:$0xf0] }
  0x54   :  { %1089 = vmatpush.bf16.msra.mxu3 %v1988_v20  ;;  %v2071_v20 = vld [vmem:[#allocation4 + $0x3c8] sm:$0xf]  ;;  %v2304_v5 = vld [vmem:[#allocation4 + $0x254] sm:$0xf0] }
  0x55   :  { %1048 = vmatpush.bf16.msra.mxu0 %v1588_v12 }
  0x56   :  { %1062 = vmatpush.bf16.msra.mxu1 %v1716_v14  ;;  %v1960_v14 = vor.u32 %v2324_v1, %v1959_v0  ;;  %v1735_v0 = vld [vmem:[#allocation4 + $0x128] sm:$0xf]  ;;  %v2268_v1 = vld [vmem:[#allocation4 + $0x134] sm:$0xf0] }
  0x57   :  { %1076 = vmatpush.bf16.msra.mxu2 %v1844_v23  ;;  %v2352_v23 = vld [vmem:[#allocation4 + $0x3d4] sm:$0xf0] }
  0x58   :  { %1090 = vmatpush.bf16.msra.mxu3 %v1972_v26  ;;  %v1783_v26 = vld [vmem:[#allocation4 + $0x188] sm:$0xf] }
  0x95   :  { %v148_v28 = vpop.f32.mrf.mxu0 }
  0x96   :  { %v162_v30 = vpop.f32.mrf.mxu1  ;;  %v149_v32 = vadd.f32 %v148_v28, %v87_v29  ;;  %v1944_v28 = vor.u32 %v2320_v19, %v1943_v18  ;;  %v2290_v18 = vld [vmem:[#allocation4 + $0x1ec] sm:$0xf]  ;;  %v1833_v19 = vld [vmem:[#allocation4 + $0x1f8] sm:$0xf0] }
  0x97   :  { %v163_v33 = vadd.f32 %v162_v30, %v88_v31  ;;  %v1656_v30 = vor.u32 %v2248_v25, %v1655_v24  ;;  %v1592_v24 = vor.u32 %v2232_v11, %v1591_v10  ;;  %v2242_v10 = vld [vmem:[#allocation4 + $0x6c] sm:$0xf]  ;;  %v1641_v11 = vld [vmem:[#allocation4 + $0x78] sm:$0xf0] }
  0x98   :  { %v195_v37 = vmax.f32 %v149_v32, 0.0  ;;  %v2316_v32 = vld [vmem:[#allocation4 + $0x2b4] sm:$0xf0] }
  0x99   :  { %v196_v42 = vmax.f32 %v163_v33, 0.0  ;;  %v1784_v33 = vor.u32 %v2280_v27, %v1783_v26  ;;  %v1991_v26 = vld [vmem:[#allocation4 + $0x328] sm:$0xf]  ;;  %v2332_v27 = vld [vmem:[#allocation4 + $0x334] sm:$0xf0] }
  0x9d   :  { %v176_v34 = vpop.f32.mrf.mxu2  ;;  %v150_v36 = vpop.f32.mrf.mxu0 }
  0x9e   :  { %v190_v35 = vpop.f32.mrf.mxu3  ;;  %v151_v38 = vadd.f32 %v150_v36, %v87_v29  ;;  %v164_v39 = vpop.f32.mrf.mxu1  ;;  %v177_v55 = vadd.f32 %v176_v34, %v89_v43  ;;  %v2072_v29 = vor.u32 %v2352_v23, %v2071_v20  ;;  %v2055_v34 = vld [vmem:[#allocation4 + $0x3a8] sm:$0xf]  ;;  %v2300_v23 = vld [vmem:[#allocation4 + $0x234] sm:$0xf0] }
  0x9f   :  { %v165_v44 = vadd.f32 %v164_v39, %v88_v31  ;;  %v191_v59 = vadd.f32 %v190_v35, %v90_v47  ;;  %v1927_v31 = vld [vmem:[#allocation4 + $0x2a8] sm:$0xf]  ;;  %v2348_v35 = vld [vmem:[#allocation4 + $0x3b4] sm:$0xf0] }
  0xa0   :  { %v199_v48 = vmax.f32 %v151_v38, 0.0  ;;  %v197_v8 = vmax.f32 %v177_v55, 0.0  ;;  %v1639_v36 = vld [vmem:[#allocation4 + $0x68] sm:$0xf]  ;;  %v2276_v39 = vld [vmem:[#allocation4 + $0x174] sm:$0xf0]  ;;  %v1928_v40 = vor.u32 %v2316_v32, %v1927_v31  ;;  %v2056_v41 = vor.u32 %v2348_v35, %v2055_v34 }
  0xa1   :  { %v200_v49 = vmax.f32 %v165_v44, 0.0  ;;  %v198_v12 = vmax.f32 %v191_v59, 0.0  ;;  %v1767_v38 = vld [vmem:[#allocation4 + $0x168] sm:$0xf]  ;;  %v1689_v32 = vld [vmem:[#allocation4 + $0xd8] sm:$0xf0]  ;;  %v1992_v35 = vor.u32 %v2332_v27, %v1991_v26 }
  0xa2   :  { %v2542_v51 = vpack.c.bf16 %v199_v48, %v195_v37  ;;  %v2244_v37 = vld [vmem:[#allocation4 + $0x74] sm:$0xf0]  ;;  %v1768_v45 = vor.u32 %v2276_v39, %v1767_v38  ;;  %v1623_v48 = vld [vmem:[#allocation4 + $0x48] sm:$0xf]  ;;  %v1817_v34 = vld [vmem:[#allocation4 + $0x1d8] sm:$0xf0] }
  0xa3   :  { %v2544_v56 = vpack.c.bf16 %v200_v49, %v196_v42  ;;  %v1911_v42 = vld [vmem:[#allocation4 + $0x288] sm:$0xf]  ;;  %v1640_v44 = vor.u32 %v2244_v37, %v1639_v36  ;;  %v2240_v49 = vld [vmem:[#allocation4 + $0x54] sm:$0xf0]  ;;  %v2270_v26 = vld [vmem:[#allocation4 + $0x14c] sm:$0xf] }
  0xa4   :  { %993 = vmatmul.bf16.vlgmr.msrb.gmra.mxu0 %v2542_v51  ;;  %v1895_v55 = vld [vmem:[#allocation4 + $0x268] sm:$0xf]  ;;  %v1624_v58 = vor.u32 %v2240_v49, %v1623_v48  ;;  %v2296_v37 = vld [vmem:[#allocation4 + $0x214] sm:$0xf0]  ;;  %v1673_v48 = vld [vmem:[#allocation4 + $0xb8] sm:$0xf0] }
  0xa5   :  { %v178_v60 = vpop.f32.mrf.mxu2  ;;  %1007 = vmatmul.bf16.vlgmr.msrb.gmra.mxu1 %v2544_v56  ;;  %1097 = vmatpush.bf16.msrb.mxu0 %v1704_v50  ;;  %v1751_v50 = vld [vmem:[#allocation4 + $0x148] sm:$0xf]  ;;  %v1896_v2 = vor.u32 %v2308_v57, %v1895_v55  ;;  %v2328_v39 = vld [vmem:[#allocation4 + $0x314] sm:$0xf0]  ;;  %v2282_v49 = vld [vmem:[#allocation4 + $0x1ac] sm:$0xf] }
  0xa6   :  { %v179_v61 = vadd.f32 %v178_v60, %v89_v43  ;;  %v192_v62 = vpop.f32.mrf.mxu3  ;;  %1111 = vmatpush.bf16.msrb.mxu1 %v1832_v52  ;;  %v2312_v43 = vld [vmem:[#allocation4 + $0x294] sm:$0xf0]  ;;  %v2023_v60 = vld [vmem:[#allocation4 + $0x368] sm:$0xf]  ;;  %v2318_v55 = vld [vmem:[#allocation4 + $0x2cc] sm:$0xf] }
  0xa7   :  { %v193_v3 = vadd.f32 %v192_v62, %v90_v47  ;;  %v2344_v47 = vld [vmem:[#allocation4 + $0x394] sm:$0xf0]  ;;  %v1912_v53 = vor.u32 %v2312_v43, %v1911_v42  ;;  %v1607_v62 = vld [vmem:[#allocation4 + $0x28] sm:$0xf]  ;;  %v1945_v57 = vld [vmem:[#allocation4 + $0x2d8] sm:$0xf0] }
  0xa8   :  { %v201_v9 = vmax.f32 %v179_v61, 0.0  ;;  %v2272_v52 = vld [vmem:[#allocation4 + $0x154] sm:$0xf0]  ;;  %v2040_v54 = vor.u32 %v2344_v47, %v2039_v46  ;;  %v1847_v36 = vld [vmem:[#allocation4 + $0x208] sm:$0xf] }
  0xa9   :  { %v202_v13 = vmax.f32 %v193_v3, 0.0  ;;  %1098 = vmatpush.bf16.msrb.mxu0 %v1688_v63  ;;  %v1752_v59 = vor.u32 %v2272_v52, %v1751_v50  ;;  %v2340_v61 = vld [vmem:[#allocation4 + $0x374] sm:$0xf0]  ;;  %v1975_v38 = vld [vmem:[#allocation4 + $0x308] sm:$0xf]  ;;  %v1848_v47 = vor.u32 %v2296_v37, %v1847_v36 }
  0xaa   :  { %v2548_v15 = vpack.c.bf16 %v201_v9, %v197_v8  ;;  %1112 = vmatpush.bf16.msrb.mxu1 %v1816_v4  ;;  %v2236_v63 = vld [vmem:[#allocation4 + $0x34] sm:$0xf0]  ;;  %v2024_v3 = vor.u32 %v2340_v61, %v2023_v60  ;;  %v1879_v4 = vld [vmem:[#allocation4 + $0x248] sm:$0xf]  ;;  %v1736_v8 = vor.u32 %v2268_v1, %v1735_v0  ;;  %v2250_v46 = vld [vmem:[#allocation4 + $0xac] sm:$0xf]  ;;  %v1976_v52 = vor.u32 %v2328_v39, %v1975_v38 }
  0xab   :  { %v2550_v21 = vpack.c.bf16 %v202_v13, %v198_v12  ;;  %v1608_v7 = vor.u32 %v2236_v63, %v1607_v62  ;;  %v2336_v9 = vld [vmem:[#allocation4 + $0x354] sm:$0xf0]  ;;  %v1719_v12 = vld [vmem:[#allocation4 + $0x108] sm:$0xf]  ;;  %v1801_v50 = vld [vmem:[#allocation4 + $0x1b8] sm:$0xf0] }
  0xac   :  { %1021 = vmatmul.bf16.vlgmr.msrb.gmra.mxu2 %v2548_v15  ;;  %v2264_v13 = vld [vmem:[#allocation4 + $0x114] sm:$0xf0]  ;;  %v2008_v20 = vor.u32 %v2336_v9, %v2007_v6  ;;  %v2350_v60 = vld [vmem:[#allocation4 + $0x3cc] sm:$0xf]  ;;  %v2073_v61 = vld [vmem:[#allocation4 + $0x3d8] sm:$0xf0] }
  0xad   :  { %1035 = vmatmul.bf16.vlgmr.msrb.gmra.mxu3 %v2550_v21  ;;  %1125 = vmatpush.bf16.msrb.mxu2 %v1960_v14  ;;  %v2258_v14 = vld [vmem:[#allocation4 + $0xec] sm:$0xf]  ;;  %v1720_v25 = vor.u32 %v2264_v13, %v1719_v12  ;;  %v1657_v63 = vld [vmem:[#allocation4 + $0x98] sm:$0xf0] }
  0xae   :  { %1139 = vmatpush.bf16.msrb.mxu3 %v2088_v16  ;;  %1099 = vmatpush.bf16.msrb.mxu0 %v1672_v17  ;;  %v1880_v16 = vor.u32 %v2304_v5, %v1879_v4  ;;  %v1705_v17 = vld [vmem:[#allocation4 + $0xf8] sm:$0xf0]  ;;  %v2246_v62 = vld [vmem:[#allocation4 + $0x8c] sm:$0xf] }
  0xaf   :  { %1113 = vmatpush.bf16.msrb.mxu1 %v1800_v22  ;;  %v1863_v22 = vld [vmem:[#allocation4 + $0x228] sm:$0xf]  ;;  %v2278_v0 = vld [vmem:[#allocation4 + $0x18c] sm:$0xf]  ;;  %v1785_v1 = vld [vmem:[#allocation4 + $0x198] sm:$0xf0]  ;;  %v1660_v6 = vor.u32 %v2246_v62, %v1657_v63 }
  0xb0   :  { %v1864_v31 = vor.u32 %v2300_v23, %v1863_v22  ;;  %v2314_v4 = vld [vmem:[#allocation4 + $0x2ac] sm:$0xf]  ;;  %v1929_v5 = vld [vmem:[#allocation4 + $0x2b8] sm:$0xf0] }
  0xb1   :  { %1126 = vmatpush.bf16.msrb.mxu2 %v1944_v28  ;;  %v1708_v28 = vor.u32 %v2258_v14, %v1705_v17  ;;  %v2057_v9 = vld [vmem:[#allocation4 + $0x3b8] sm:$0xf0]  ;;  %v2274_v12 = vld [vmem:[#allocation4 + $0x16c] sm:$0xf]  ;;  %v1932_v14 = vor.u32 %v2314_v4, %v1929_v5 }
  0xb2   :  { %1140 = vmatpush.bf16.msrb.mxu3 %v2072_v29  ;;  %1100 = vmatpush.bf16.msrb.mxu0 %v1656_v30  ;;  %v1836_v29 = vor.u32 %v2290_v18, %v1833_v19  ;;  %v2254_v30 = vld [vmem:[#allocation4 + $0xcc] sm:$0xf]  ;;  %v1769_v13 = vld [vmem:[#allocation4 + $0x178] sm:$0xf0]  ;;  %v1644_v19 = vor.u32 %v2242_v10, %v1641_v11 }
  0xb3   :  { %1114 = vmatpush.bf16.msrb.mxu1 %v1784_v33  ;;  %v2286_v33 = vld [vmem:[#allocation4 + $0x1cc] sm:$0xf]  ;;  %v1692_v42 = vor.u32 %v2254_v30, %v1689_v32  ;;  %v1913_v18 = vld [vmem:[#allocation4 + $0x298] sm:$0xf0] }
  0xb4   :  { %1049 = vmatmul.bf16.vlgmr.msra.gmra.mxu0 %v2542_v51  ;;  %v1820_v43 = vor.u32 %v2286_v33, %v1817_v34  ;;  %v2310_v17 = vld [vmem:[#allocation4 + $0x28c] sm:$0xf]  ;;  %v2041_v23 = vld [vmem:[#allocation4 + $0x398] sm:$0xf0] }
  0xb5   :  { %1127 = vmatpush.bf16.msrb.mxu2 %v1928_v40  ;;  %1063 = vmatmul.bf16.vlgmr.msra.gmra.mxu1 %v2544_v56  ;;  %v2322_v40 = vld [vmem:[#allocation4 + $0x2ec] sm:$0xf]  ;;  %v1753_v27 = vld [vmem:[#allocation4 + $0x158] sm:$0xf0] }
  0xb6   :  { %1141 = vmatpush.bf16.msrb.mxu3 %v2056_v41  ;;  %1101 = vmatpush.bf16.msrb.mxu0 %v1640_v44  ;;  %v1961_v41 = vld [vmem:[#allocation4 + $0x2f8] sm:$0xf0]  ;;  %v2354_v44 = vld [vmem:[#allocation4 + $0x3ec] sm:$0xf]  ;;  %v1756_v33 = vor.u32 %v2270_v26, %v1753_v27  ;;  %v2365_v27 = vld [vmem:[#allocation6 + $0x40] sm:$0xff] }
  0xb7   :  { %1115 = vmatpush.bf16.msrb.mxu1 %v1768_v45  ;;  %v2089_v45 = vld [vmem:[#allocation4 + $0x3f8] sm:$0xf0]  ;;  %v2342_v22 = vld [vmem:[#allocation4 + $0x38c] sm:$0xf] }
  0xb8   :  { %v2306_v30 = vld [vmem:[#allocation4 + $0x26c] sm:$0xf]  ;;  %v1609_v37 = vld [vmem:[#allocation4 + $0x38] sm:$0xf0] }
  0xb9   :  { %1128 = vmatpush.bf16.msrb.mxu2 %v1912_v53  ;;  %v1964_v53 = vor.u32 %v2322_v40, %v1961_v41  ;;  %v2338_v34 = vld [vmem:[#allocation4 + $0x36c] sm:$0xf]  ;;  %v1737_v39 = vld [vmem:[#allocation4 + $0x138] sm:$0xf0] }
  0xba   :  { %1142 = vmatpush.bf16.msrb.mxu3 %v2040_v54  ;;  %1102 = vmatpush.bf16.msrb.mxu0 %v1624_v58  ;;  %v2092_v54 = vor.u32 %v2354_v44, %v2089_v45  ;;  %v1676_v58 = vor.u32 %v2250_v46, %v1673_v48  ;;  %v2234_v36 = vld [vmem:[#allocation4 + $0x2c] sm:$0xf]  ;;  %v2364_v62 = vld [vmem:[#allocation6 + $0x38] sm:$0xff] }
  0xbb   :  { %1116 = vmatpush.bf16.msrb.mxu1 %v1752_v59  ;;  %v1804_v59 = vor.u32 %v2282_v49, %v1801_v50  ;;  %v2266_v38 = vld [vmem:[#allocation4 + $0x12c] sm:$0xf]  ;;  %v1612_v44 = vor.u32 %v2234_v36, %v1609_v37  ;;  %v1593_v49 = vld [vmem:[#allocation4 + $0x18] sm:$0xf0] }
  0xbc   :  { %1077 = vmatmul.bf16.vlgmr.msra.gmra.mxu2 %v2548_v15  ;;  %v1740_v45 = vor.u32 %v2266_v38, %v1737_v39  ;;  %v2334_v46 = vld [vmem:[#allocation4 + $0x34c] sm:$0xf]  ;;  %v1977_v4 = vld [vmem:[#allocation4 + $0x318] sm:$0xf0]  ;;  %v2375_v38 = vld [vmem:[#allocation6 + $0x90] sm:$0xff] }
  0xbd   :  { %1091 = vmatmul.bf16.vlgmr.msra.gmra.mxu3 %v2550_v21  ;;  %1129 = vmatpush.bf16.msrb.mxu2 %v1896_v2  ;;  %v1948_v2 = vor.u32 %v2318_v55, %v1945_v57  ;;  %v2230_v48 = vld [vmem:[#allocation4 + $0xc] sm:$0xf]  ;;  %v1865_v57 = vld [vmem:[#allocation4 + $0x238] sm:$0xf0] }
  0xbe   :  { %1143 = vmatpush.bf16.msrb.mxu3 %v2024_v3  ;;  %1103 = vmatpush.bf16.msrb.mxu0 %v1608_v7  ;;  %v2076_v3 = vor.u32 %v2350_v60, %v2073_v61  ;;  %v1788_v7 = vor.u32 %v2278_v0, %v1785_v1  ;;  %v2262_v50 = vld [vmem:[#allocation4 + $0x10c] sm:$0xf]  ;;  %v1993_v61 = vld [vmem:[#allocation4 + $0x338] sm:$0xf0] }
  0xbf   :  { %1117 = vmatpush.bf16.msrb.mxu1 %v1736_v8  ;;  %v2346_v8 = vld [vmem:[#allocation4 + $0x3ac] sm:$0xf]  ;;  %v2360_v10 = vld [vmem:[#allocation6 + $0x18] sm:$0xff] }
  0xc0   :  { %v2298_v55 = vld [vmem:[#allocation4 + $0x22c] sm:$0xf]  ;;  %v2372_v11 = vld [vmem:[#allocation6 + $0x78] sm:$0xff] }
  0xc1   :  { %1130 = vmatpush.bf16.msrb.mxu2 %v1880_v16  ;;  %v2060_v16 = vor.u32 %v2346_v8, %v2057_v9  ;;  %v2330_v60 = vld [vmem:[#allocation4 + $0x32c] sm:$0xf]  ;;  %v1868_v63 = vor.u32 %v2298_v55, %v1865_v57  ;;  %v2361_v9 = vld [vmem:[#allocation6 + $0x20] sm:$0xff] }
  0xc2   :  { %1144 = vmatpush.bf16.msrb.mxu3 %v2008_v20  ;;  %1104 = vmatpush.bf16.msrb.mxu0 %v1592_v24  ;;  %v1772_v20 = vor.u32 %v2274_v12, %v1769_v13  ;;  %v2238_v24 = vld [vmem:[#allocation4 + $0x4c] sm:$0xf]  ;;  %v1996_v0 = vor.u32 %v2330_v60, %v1993_v61  ;;  %v2371_v12 = vld [vmem:[#allocation6 + $0x70] sm:$0xff] }
  0xc3   :  { %1118 = vmatpush.bf16.msrb.mxu1 %v1720_v25  ;;  %v1625_v25 = vld [vmem:[#allocation4 + $0x58] sm:$0xf0]  ;;  %v2294_v1 = vld [vmem:[#allocation4 + $0x20c] sm:$0xf] }
  0xc4   :  { %v1628_v32 = vor.u32 %v2238_v24, %v1625_v25  ;;  %v2362_v8 = vld [vmem:[#allocation6 + $0x28] sm:$0xff] }
  0xc5   :  { %1131 = vmatpush.bf16.msrb.mxu2 %v1864_v31  ;;  %1105 = vmatmul.bf16.vlgmr.msrb.gmra.mxu0 %v2542_v51  ;;  %v1897_v31 = vld [vmem:[#allocation4 + $0x278] sm:$0xf0]  ;;  %v2370_v13 = vld [vmem:[#allocation6 + $0x68] sm:$0xff] }
  0xc6   :  { %1153 = vmatpush.bf16.msra.mxu0 %v1708_v28  ;;  %1145 = vmatpush.bf16.msrb.mxu3 %v1992_v35  ;;  %v1916_v28 = vor.u32 %v2310_v17, %v1913_v18  ;;  %v2025_v35 = vld [vmem:[#allocation4 + $0x378] sm:$0xf0]  ;;  %v1900_v40 = vor.u32 %v2306_v30, %v1897_v31  ;;  %v2378_v24 = vld [vmem:[#allocation6 + $0xa8] sm:$0xff] }
  0xc7   :  { %1167 = vmatpush.bf16.msra.mxu1 %v1836_v29  ;;  %v2044_v29 = vor.u32 %v2342_v22, %v2041_v23  ;;  %v2028_v41 = vor.u32 %v2338_v34, %v2025_v35  ;;  %v2569_v22 = vld [vmem:[%s2588_s4] sm:$0xf]  ;;  %v2366_v23 = vld [vmem:[#allocation6 + $0x48] sm:$0xff] }
  0xc8   :  { %1119 = vmatmul.bf16.vlgmr.msrb.gmra.mxu1 %v2544_v56  ;;  %v337_v25 = vperm.slane %v2569_v22, 0 }
  0xc9   :  { %1132 = vmatpush.bf16.msrb.mxu2 %v1848_v47  ;;  %v2009_v47 = vld [vmem:[#allocation4 + $0x358] sm:$0xf0] }
  0xca   :  { %1154 = vmatpush.bf16.msra.mxu0 %v1692_v42  ;;  %1146 = vmatpush.bf16.msrb.mxu3 %v1976_v52  ;;  %v2302_v42 = vld [vmem:[#allocation4 + $0x24c] sm:$0xf]  ;;  %v1721_v52 = vld [vmem:[#allocation4 + $0x118] sm:$0xf0] }
  0xcb   :  { %1168 = vmatpush.bf16.msra.mxu1 %v1820_v43  ;;  %v1881_v43 = vld [vmem:[#allocation4 + $0x258] sm:$0xf0] }
  0xcc   :  { %1133 = vmatmul.bf16.vlgmr.msrb.gmra.mxu2 %v2548_v15 }
  0xcd   :  { %1181 = vmatpush.bf16.msra.mxu2 %v1964_v53  ;;  %1147 = vmatmul.bf16.vlgmr.msrb.gmra.mxu3 %v2550_v21  ;;  %v1884_v53 = vor.u32 %v2302_v42, %v1881_v43 }
  0xce   :  { %1195 = vmatpush.bf16.msra.mxu3 %v2092_v54  ;;  %1155 = vmatpush.bf16.msra.mxu0 %v1676_v58  ;;  %v2012_v54 = vor.u32 %v2334_v46, %v2009_v47  ;;  %v1596_v58 = vor.u32 %v2230_v48, %v1593_v49  ;;  %v338_v46 = vperm.slane %v2569_v22, 1 }
  0xcf   :  { %1169 = vmatpush.bf16.msra.mxu1 %v1804_v59  ;;  %v1724_v59 = vor.u32 %v2262_v50, %v1721_v52  ;;  %v2373_v52 = vld [vmem:[#allocation6 + $0x80] sm:$0xff] }
  0xd1   :  { %1182 = vmatpush.bf16.msra.mxu2 %v1948_v2  ;;  %v1849_v2 = vld [vmem:[#allocation4 + $0x218] sm:$0xf0] }
  0xd2   :  { %1196 = vmatpush.bf16.msra.mxu3 %v2076_v3  ;;  %1156 = vmatpush.bf16.msra.mxu0 %v1660_v6  ;;  %v2326_v3 = vld [vmem:[#allocation4 + $0x30c] sm:$0xf]  ;;  %v1852_v5 = vor.u32 %v2294_v1, %v1849_v2 }
  0xd3   :  { %1170 = vmatpush.bf16.msra.mxu1 %v1788_v7  ;;  %v1980_v6 = vor.u32 %v2326_v3, %v1977_v4  ;;  %v2363_v7 = vld [vmem:[#allocation6 + $0x30] sm:$0xff] }
  0xd5   :  { %1183 = vmatpush.bf16.msra.mxu2 %v1932_v14  ;;  %v2368_v14 = vld [vmem:[#allocation6 + $0x58] sm:$0xff] }
  0xd6   :  { %1197 = vmatpush.bf16.msra.mxu3 %v2060_v16  ;;  %1157 = vmatpush.bf16.msra.mxu0 %v1644_v19  ;;  %v2380_v16 = vld [vmem:[#allocation6 + $0xb8] sm:$0xff]  ;;  %v2367_v19 = vld [vmem:[#allocation6 + $0x50] sm:$0xff] }
  0xd7   :  { %1171 = vmatpush.bf16.msra.mxu1 %v1772_v20  ;;  %v2379_v20 = vld [vmem:[#allocation6 + $0xb0] sm:$0xff] }
  0xd9   :  { %1184 = vmatpush.bf16.msra.mxu2 %v1916_v28  ;;  %v2377_v28 = vld [vmem:[#allocation6 + $0xa0] sm:$0xff] }
  0xda   :  { %1198 = vmatpush.bf16.msra.mxu3 %v2044_v29  ;;  %1158 = vmatpush.bf16.msra.mxu0 %v1628_v32 }
  0xdb   :  { %1172 = vmatpush.bf16.msra.mxu1 %v1756_v33  ;;  %v2376_v33 = vld [vmem:[#allocation6 + $0x98] sm:$0xff] }
  0xdd   :  { %1185 = vmatpush.bf16.msra.mxu2 %v1900_v40 }
  0xde   :  { %1199 = vmatpush.bf16.msra.mxu3 %v2028_v41  ;;  %1159 = vmatpush.bf16.msra.mxu0 %v1612_v44 }
  0xdf   :  { %1173 = vmatpush.bf16.msra.mxu1 %v1740_v45  ;;  %v2374_v45 = vld [vmem:[#allocation6 + $0x88] sm:$0xff] }
  0xe1   :  { %1186 = vmatpush.bf16.msra.mxu2 %v1884_v53  ;;  %v2388_v53 = vld [vmem:[#allocation6 + $0xf8] sm:$0xff] }
  0xe2   :  { %1200 = vmatpush.bf16.msra.mxu3 %v2012_v54  ;;  %1160 = vmatpush.bf16.msra.mxu0 %v1596_v58 }
  0xe3   :  { %1174 = vmatpush.bf16.msra.mxu1 %v1724_v59  ;;  %v2387_v59 = vld [vmem:[#allocation6 + $0xf0] sm:$0xff] }
  0xe5   :  { %1187 = vmatpush.bf16.msra.mxu2 %v1868_v63  ;;  %1161 = vmatmul.bf16.vlgmr.msra.gmra.mxu0 %v2542_v51  ;;  %v2359_v51 = vld [vmem:[#allocation6 + $0x10] sm:$0xff]  ;;  %v2386_v63 = vld [vmem:[#allocation6 + $0xe8] sm:$0xff] }
  0xe6   :  { %1481 = vmatpush.bf16.msrb.mxu0 %v2364_v62  ;;  %1201 = vmatpush.bf16.msra.mxu3 %v1996_v0 }
  0xe7   :  { %1175 = vmatmul.bf16.vlgmr.msra.gmra.mxu1 %v2544_v56  ;;  %v2358_v56 = vld [vmem:[#allocation6 + $0x8] sm:$0xff] }
  0xe8   :  { %1495 = vmatpush.bf16.msrb.mxu1 %v2372_v11 }
  0xe9   :  { %1188 = vmatpush.bf16.msra.mxu2 %v1852_v5 }
  0xea   :  { %1202 = vmatpush.bf16.msra.mxu3 %v1980_v6  ;;  %1482 = vmatpush.bf16.msrb.mxu0 %v2363_v7  ;;  %v2385_v7 = vld [vmem:[#allocation6 + $0xe0] sm:$0xff] }
  0xec   :  { %1189 = vmatmul.bf16.vlgmr.msra.gmra.mxu2 %v2548_v15  ;;  %1496 = vmatpush.bf16.msrb.mxu1 %v2371_v12  ;;  %v2357_v15 = vld [vmem:[#allocation6] sm:$0xff]  ;;  %v2384_v12 = vld [vmem:[#allocation6 + $0xd8] sm:$0xff] }
  0xed   :  { %1203 = vmatmul.bf16.vlgmr.msra.gmra.mxu3 %v2550_v21  ;;  %v2369_v21 = vld [vmem:[#allocation6 + $0x60] sm:$0xff]  ;;  %1509 = vmatpush.bf16.msrb.mxu2 %v2380_v16  ;;  %v2383_v16 = vld [vmem:[#allocation6 + $0xd0] sm:$0xff] }
  0xee   :  { %1483 = vmatpush.bf16.msrb.mxu0 %v2362_v8  ;;  %1523 = vmatpush.bf16.msrb.mxu3 %v2388_v53 }
  0xf0   :  { %1497 = vmatpush.bf16.msrb.mxu1 %v2370_v13 }
  0xf1   :  { %1510 = vmatpush.bf16.msrb.mxu2 %v2379_v20  ;;  %v2382_v20 = vld [vmem:[#allocation6 + $0xc8] sm:$0xff] }
  0xf2   :  { %1484 = vmatpush.bf16.msrb.mxu0 %v2361_v9  ;;  %1524 = vmatpush.bf16.msrb.mxu3 %v2387_v59  ;;  %v339_v9 = vperm.slane %v2569_v22, 2 }
  0xf4   :  { %1498 = vmatpush.bf16.msrb.mxu1 %v2369_v21 }
  0xf5   :  { %1511 = vmatpush.bf16.msrb.mxu2 %v2378_v24 }
  0xf6   :  { %1485 = vmatpush.bf16.msrb.mxu0 %v2360_v10  ;;  %1525 = vmatpush.bf16.msrb.mxu3 %v2386_v63 }
  0xf8   :  { %1499 = vmatpush.bf16.msrb.mxu1 %v2368_v14 }
  0xf9   :  { %1512 = vmatpush.bf16.msrb.mxu2 %v2377_v28  ;;  %v2381_v28 = vld [vmem:[#allocation6 + $0xc0] sm:$0xff] }
  0xfa   :  { %1486 = vmatpush.bf16.msrb.mxu0 %v2359_v51  ;;  %1526 = vmatpush.bf16.msrb.mxu3 %v2385_v7 }
  0xfc   :  { %1500 = vmatpush.bf16.msrb.mxu1 %v2367_v19 }
  0xfd   :  { %1513 = vmatpush.bf16.msrb.mxu2 %v2376_v33 }
  0xfe   :  { %1487 = vmatpush.bf16.msrb.mxu0 %v2358_v56  ;;  %1527 = vmatpush.bf16.msrb.mxu3 %v2384_v12 }
 0x100   :  { %1501 = vmatpush.bf16.msrb.mxu1 %v2366_v23 }
 0x101   :  { %1514 = vmatpush.bf16.msrb.mxu2 %v2375_v38 }
 0x102   :  { %1488 = vmatpush.bf16.msrb.mxu0 %v2357_v15  ;;  %1528 = vmatpush.bf16.msrb.mxu3 %v2383_v16 }
 0x104   :  { %1502 = vmatpush.bf16.msrb.mxu1 %v2365_v27 }
 0x105   :  { %1515 = vmatpush.bf16.msrb.mxu2 %v2374_v45 }
 0x106   :  { %1529 = vmatpush.bf16.msrb.mxu3 %v2382_v20 }
 0x109   :  { %1516 = vmatpush.bf16.msrb.mxu2 %v2373_v52 }
 0x10a   :  { %1530 = vmatpush.bf16.msrb.mxu3 %v2381_v28 }
 0x121   :  { %v994_v17 = vpop.f32.mrf.mxu0 }
 0x122   :  { %v1008_v18 = vpop.f32.mrf.mxu1  ;;  %v995_v29 = vadd.f32 %v994_v17, %v337_v25 }
 0x124   :  { %v1009_v34 = vadd.f32 %v1008_v18, %v995_v29 }
 0x129   :  { %v996_v26 = vpop.f32.mrf.mxu0 }
 0x12a   :  { %v1010_v30 = vpop.f32.mrf.mxu1  ;;  %v997_v35 = vadd.f32 %v996_v26, %v337_v25 }
 0x12c   :  { %v1011_v39 = vadd.f32 %v1010_v30, %v997_v35  ;;  %v340_v35 = vperm.slane %v2569_v22, 3 }
 0x12f   :  { %v1022_v31 = vpop.f32.mrf.mxu2 }
 0x130   :  { %v1036_v32 = vpop.f32.mrf.mxu3  ;;  %v1023_v37 = vadd.f32 %v1022_v31, %v1009_v34 }
 0x131   :  { %v1050_v36 = vpop.f32.mrf.mxu0 }
 0x132   :  { %v1037_v41 = vadd.f32 %v1036_v32, %v1023_v37  ;;  %v1064_v42 = vpop.f32.mrf.mxu1  ;;  %v1051_v54 = vadd.f32 %v1050_v36, %v338_v46 }
 0x134   :  { %v1209_v49 = vmax.f32 %v1037_v41, 0.0  ;;  %v1065_v60 = vadd.f32 %v1064_v42, %v1051_v54 }
 0x137   :  { %v1024_v40 = vpop.f32.mrf.mxu2 }
 0x138   :  { %v1025_v43 = vadd.f32 %v1024_v40, %v1011_v39  ;;  %v1038_v44 = vpop.f32.mrf.mxu3 }
 0x139   :  { %v1052_v48 = vpop.f32.mrf.mxu0 }
 0x13a   :  { %v1039_v47 = vadd.f32 %v1038_v44, %v1025_v43  ;;  %v1053_v61 = vadd.f32 %v1052_v48, %v338_v46  ;;  %v1066_v62 = vpop.f32.mrf.mxu1 }
 0x13c   :  { %v1213_v50 = vmax.f32 %v1039_v47, 0.0  ;;  %v1067_v2 = vadd.f32 %v1066_v62, %v1053_v61 }
 0x13e   :  { %v1217_v55 = vpack.c.bf16 %v1213_v50, %v1209_v49 }
 0x13f   :  { %v1078_v57 = vpop.f32.mrf.mxu2 }
 0x140   :  { %v1092_v58 = vpop.f32.mrf.mxu3  ;;  %1489 = vmatmul.bf16.vlgmr.msrb.gmra.mxu0 %v1217_v55  ;;  %v1079_v0 = vadd.f32 %v1078_v57, %v1065_v60  ;;  %v2396_v55 = vld [vmem:[%s2590_s6] ss:$0 sm:$0xff] }
 0x142   :  { %v1106_v1 = vpop.f32.mrf.mxu0  ;;  %v1093_v4 = vadd.f32 %v1092_v58, %v1079_v0 }
 0x143   :  { %v1107_v13 = vadd.f32 %v1106_v1, %v339_v9 }
 0x144   :  { %v1210_v10 = vmax.f32 %v1093_v4, 0.0 }
 0x145   :  { %v1120_v11 = vpop.f32.mrf.mxu1 }
 0x146   :  { %v1121_v17 = vadd.f32 %v1120_v11, %v1107_v13 }
 0x147   :  { %v1080_v3 = vpop.f32.mrf.mxu2 }
 0x148   :  { %v1081_v5 = vadd.f32 %v1080_v3, %v1067_v2  ;;  %v1094_v6 = vpop.f32.mrf.mxu3 }
 0x14a   :  { %v1095_v8 = vadd.f32 %v1094_v6, %v1081_v5  ;;  %v1108_v15 = vpop.f32.mrf.mxu0 }
 0x14b   :  { %v1109_v18 = vadd.f32 %v1108_v15, %v339_v9 }
 0x14c   :  { %v1214_v51 = vmax.f32 %v1095_v8, 0.0 }
 0x14d   :  { %v1122_v23 = vpop.f32.mrf.mxu1 }
 0x14e   :  { %v1218_v56 = vpack.c.bf16 %v1214_v51, %v1210_v10  ;;  %v1123_v24 = vadd.f32 %v1122_v23, %v1109_v18 }
 0x14f   :  { %v1134_v21 = vpop.f32.mrf.mxu2 }
 0x150   :  { %v1148_v14 = vpop.f32.mrf.mxu3  ;;  %1503 = vmatmul.bf16.vlgmr.msrb.gmra.mxu1 %v1218_v56  ;;  %v1135_v19 = vadd.f32 %v1134_v21, %v1121_v17 }
 0x152   :  { %v1149_v26 = vadd.f32 %v1148_v14, %v1135_v19 }
 0x154   :  { %v1211_v31 = vmax.f32 %v1149_v26, 0.0 }
 0x157   :  { %v1136_v25 = vpop.f32.mrf.mxu2 }
 0x158   :  { %v1137_v27 = vadd.f32 %v1136_v25, %v1123_v24  ;;  %v1150_v29 = vpop.f32.mrf.mxu3 }
 0x15a   :  { %v1151_v30 = vadd.f32 %v1150_v29, %v1137_v27 }
 0x15c   :  { %v1215_v32 = vmax.f32 %v1151_v30, 0.0 }
 0x15e   :  { %v1219_v33 = vpack.c.bf16 %v1215_v32, %v1211_v31 }
 0x160   :  { %1517 = vmatmul.bf16.vlgmr.msrb.gmra.mxu2 %v1219_v33 }
 0x162   :  { %v1162_v34 = vpop.f32.mrf.mxu0 }
 0x163   :  { %v1163_v37 = vadd.f32 %v1162_v34, %v340_v35 }
 0x164   :  { %v1176_v36 = vpop.f32.mrf.mxu1 }
 0x165   :  { %v1177_v41 = vadd.f32 %v1176_v36, %v1163_v37 }
 0x16a   :  { %v1164_v38 = vpop.f32.mrf.mxu0 }
 0x16b   :  { %v1165_v42 = vadd.f32 %v1164_v38, %v340_v35 }
 0x16c   :  { %v1178_v44 = vpop.f32.mrf.mxu1 }
 0x16d   :  { %v1179_v45 = vadd.f32 %v1178_v44, %v1165_v42 }
 0x16f   :  { %v1190_v39 = vpop.f32.mrf.mxu2 }
 0x170   :  { %v1204_v40 = vpop.f32.mrf.mxu3  ;;  %v1191_v43 = vadd.f32 %v1190_v39, %v1177_v41 }
 0x172   :  { %v1205_v47 = vadd.f32 %v1204_v40, %v1191_v43 }
 0x174   :  { %v1212_v52 = vmax.f32 %v1205_v47, 0.0 }
 0x177   :  { %v1192_v46 = vpop.f32.mrf.mxu2 }
 0x178   :  { %v1193_v48 = vadd.f32 %v1192_v46, %v1179_v45  ;;  %v1206_v49 = vpop.f32.mrf.mxu3 }
 0x17a   :  { %v1207_v50 = vadd.f32 %v1206_v49, %v1193_v48 }
 0x17c   :  { %v1216_v53 = vmax.f32 %v1207_v50, 0.0 }
 0x17e   :  { %v1220_v54 = vpack.c.bf16 %v1216_v53, %v1212_v52 }
 0x180   :  { %1531 = vmatmul.bf16.vlgmr.msrb.gmra.mxu3 %v1220_v54 }
 0x1bd   :  { %v1490_v22 = vpop.f32.mrf.mxu0 }
 0x1be   :  { %v1491_v59 = vadd.f32 %v2396_v55, %v1490_v22 }
 0x1c5   :  { %v1492_v62 = vpop.f32.mrf.mxu0 }
 0x1c6   :  { %v1493_v2 = vadd.f32 %v2396_v55, %v1492_v62 }
 0x1cd   :  { %v1504_v57 = vpop.f32.mrf.mxu1 }
 0x1ce   :  { %v1505_v60 = vadd.f32 %v1504_v57, %v1491_v59 }
 0x1d5   :  { %v1506_v1 = vpop.f32.mrf.mxu1 }
 0x1d6   :  { %v1507_v4 = vadd.f32 %v1506_v1, %v1493_v2 }
 0x1e3   :  { %v1518_v58 = vpop.f32.mrf.mxu2 }
 0x1e4   :  { %v1519_v61 = vadd.f32 %v1518_v58, %v1505_v60 }
 0x1eb   :  { %v1520_v3 = vpop.f32.mrf.mxu2 }
 0x1ec   :  { %v1521_v5 = vadd.f32 %v1520_v3, %v1507_v4 }
 0x203   :  { %v1532_v63 = vpop.f32.mrf.mxu3 }
 0x204   :  { %v1533_v0 = vadd.f32 %v1532_v63, %v1519_v61 }
 0x206   :  { %1537 = vst [vmem:[%s2591_s7] sm:$0xff] %v1533_v0 }
 0x20b   :  { %v1534_v6 = vpop.f32.mrf.mxu3 }
 0x20c   :  { %v1535_v7 = vadd.f32 %v1534_v6, %v1521_v5 }
 0x20e   :  { %1538 = vst [vmem:[%s2591_s7 + $0x8] sm:$0xff] %v1535_v7 }
 0x20f   :  { %1543 = vsyncpa [#allocation3], 1 }
 0x210   :  { %1544 = vsyncpa [#allocation5], 1 }

</bundles_post_ra>
